<compile_context>
chip_gen: v5e
topology: v5e:2x2
jax: 0.10.0
libtpu: 0.0.40
codegen_flags: <defaults>
</compile_context>

<pallas_src>
import functools
import math

import jax
import jax.numpy as jnp
from jax.experimental import pallas as pl
from jax.experimental.pallas import tpu as pltpu


# Target hw elements per grid step (summed over the folded batch).  At
# C_lat = C_cond = 4 in f32 this is ~6 MiB of double-buffered z + cond + u
# per step -- big enough to reach the HBM roofline, small enough (including
# in-kernel f32 intermediates) to stay well under v7x's 64 MiB VMEM.
_MAX_BLOCK_HW = 64 * 1024


def _decorrelator_kernel(*refs, n_data, n_dims):
    """Grid = (batch_groups, hw_tiles).

    refs = (z, data_0..data_{n-1}, ws_t, bs, wt_t, bt, u, ll, acc):
      z_ref      : (b_tile, C_lat, hw_tile)   latent sample tile (HW on lanes)
      data_i_ref : (b_tile, C_i,   hw_tile)   conditioning tiles
      ws_ref     : (C_lat, C_cond)            1x1-conv weight (scale), transposed
      bs_ref     : (C_lat, 1)                 bias (scale)
      wt_ref     : (C_lat, C_cond)            1x1-conv weight (shift), transposed
      bt_ref     : (C_lat, 1)                 bias (shift)
      u_ref      : (b_tile, C_lat, hw_tile)   output sample tile
      ll_ref     : (b_tile, 128)              per-sample ll/dim (last tile only)
      acc_ref    : (b_tile, C_lat, 1) VMEM    per-(sample, channel) partial sums
    """
    z_ref = refs[0]
    data_refs = refs[1:1 + n_data]
    ws_ref, bs_ref, wt_ref, bt_ref = refs[1 + n_data:5 + n_data]
    u_ref, ll_ref = refs[5 + n_data], refs[6 + n_data]
    acc_ref = refs[7 + n_data]

    h = pl.program_id(1)

    @pl.when(h == 0)
    def _init():
        acc_ref[...] = jnp.zeros_like(acc_ref)

    z = z_ref[...].astype(jnp.float32)           # (b_tile, C_lat, hw_tile)
    ws_t = ws_ref[...].astype(jnp.float32)       # (C_lat, C_cond)
    wt_t = wt_ref[...].astype(jnp.float32)
    bs_c = bs_ref[...].astype(jnp.float32)       # (C_lat, 1)
    bt_c = bt_ref[...].astype(jnp.float32)

    # 1x1 conv over the (virtually concatenated) condition channels, unrolled
    # as full-tile broadcast FMAs on the VPU.  Every term is a lane-dense
    # (b_tile, C_lat, hw_tile) FMA; the degenerate 4x4 matmul would leave the
    # MXU <1% utilized.
    s = None
    t = None
    c_off = 0
    for d_ref in data_refs:
        d = d_ref[...].astype(jnp.float32)       # (b_tile, C_i, hw_tile)
        for c in range(d.shape[1]):
            # One explicit sublane-broadcast of the condition row, reused by
            # both the scale and shift branches.
            row = jnp.broadcast_to(d[:, c:c + 1, :], z.shape)
            ws_col = ws_t[:, c_off + c:c_off + c + 1][None, :, :]   # (1,C_lat,1)
            wt_col = wt_t[:, c_off + c:c_off + c + 1][None, :, :]
            s = row * ws_col if s is None else s + row * ws_col
            t = row * wt_col if t is None else t + row * wt_col
        c_off += d.shape[1]
    s = s + bs_c[None, :, :]                     # (b_tile, C_lat, hw_tile)
    t = t + bt_c[None, :, :]

    # Reverse-direction affine flow (exp on the EUP, FMAs on the VPU).
    u_ref[...] = (z * jnp.exp(s) + t).astype(u_ref.dtype)

    # Fused prior (-0.5*z^2) + log|det| (s) reduction.  Only the lane axis is
    # reduced per tile (tree reduce); per-(sample, channel) partials are
    # accumulated in VMEM -- no SMEM scalar round-trip, no long sequential
    # scalar summation.
    acc_ref[...] += jnp.sum(s - 0.5 * z * z, axis=-1, keepdims=True)

    @pl.when(h == pl.num_programs(1) - 1)
    def _finalize():
        per_sample = jnp.sum(acc_ref[...], axis=1)                 # (b_tile, 1)
        ll = per_sample / n_dims - 0.5 * math.log(2.0 * math.pi)
        ll_ref[...] = jnp.broadcast_to(ll, ll_ref.shape).astype(ll_ref.dtype)


def _choose_tiling(batch, hw_pad):
    """Pick (b_tile, hw_tile): b_tile divides batch, hw_tile divides hw_pad
    (multiple of 128), with b_tile * hw_tile close to _MAX_BLOCK_HW."""
    if hw_pad >= _MAX_BLOCK_HW:
        hw_tile = _MAX_BLOCK_HW
        while hw_pad % hw_tile != 0:
            hw_tile -= 128
        return 1, hw_tile
    # Small images: fold batch into the block so DMAs stay large and vregs
    # stay sublane-full.
    b_tile = min(batch, max(1, _MAX_BLOCK_HW // hw_pad))
    while batch % b_tile != 0:
        b_tile -= 1
    return b_tile, hw_pad


def decorrelator_forward(data, params, sample_key, b_tile=None, hw_tile=None):
    """Mirrors Decorrelator.forward(*data) -> (u, ll).

    data: list of NCHW float32 arrays (same B, H, W; channels may differ).
    Returns u in NCHW layout (B, C_lat, H, W), ll of shape (B,), and the
    sampled z (NCHW) for reference checking.
    """
    ws, bs, wt, bt = params["ws"], params["bs"], params["wt"], params["bt"]

    batch, _, height, width = data[0].shape
    c_lat = ws.shape[1]
    c_cond = sum(d.shape[1] for d in data)
    assert ws.shape[0] == c_cond and wt.shape == ws.shape
    hw = height * width
    hw_pad = ((hw + 127) // 128) * 128
    pad = hw_pad - hw

    # z = latent_space.generate_sample(batch_size=B): standard Gaussian.
    z_nchw = jax.random.normal(sample_key, (batch, c_lat, height, width),
                               dtype=jnp.float32)

    # NCHW -> (B, C, H*W) is a FREE reshape; H*W lands on the 128-lane axis.
    z_flat = z_nchw.reshape(batch, c_lat, hw)
    data_flat = [d.astype(jnp.float32).reshape(batch, d.shape[1], hw)
                 for d in data]
    if pad:
        cfg = ((0, 0), (0, 0), (0, pad))
        z_flat = jnp.pad(z_flat, cfg)
        data_flat = [jnp.pad(d, cfg) for d in data_flat]

    auto_b, auto_hw = _choose_tiling(batch, hw_pad)
    if b_tile is None:
        b_tile = auto_b
    if hw_tile is None:
        hw_tile = auto_hw
    assert batch % b_tile == 0, "b_tile must divide batch"
    assert hw_pad % hw_tile == 0 and (hw_tile == hw_pad or hw_tile % 128 == 0)
    n_b_groups = batch // b_tile
    n_hw_tiles = hw_pad // hw_tile
    n_dims = float(c_lat * hw)        # true (unpadded) latent dimensionality

    # Weights pre-transposed so each weight column broadcasts directly over
    # (b_tile, C_lat, hw_tile) tiles inside the kernel.
    ws_t = ws.T.astype(jnp.float32)               # (C_lat, C_cond)
    wt_t = wt.T.astype(jnp.float32)
    bs_c = bs.reshape(c_lat, 1).astype(jnp.float32)
    bt_c = bt.reshape(c_lat, 1).astype(jnp.float32)

    kernel = functools.partial(_decorrelator_kernel, n_data=len(data),
                               n_dims=n_dims)

    tile_map = lambda b, h: (b, 0, h)
    const_map = lambda b, h: (0, 0)
    in_specs = [pl.BlockSpec((b_tile, c_lat, hw_tile), tile_map)]          # z
    in_specs += [pl.BlockSpec((b_tile, d.shape[1], hw_tile), tile_map)
                 for d in data_flat]                                       # data_i
    in_specs += [pl.BlockSpec((c_lat, c_cond), const_map),                 # ws_t
                 pl.BlockSpec((c_lat, 1), const_map),                      # bs
                 pl.BlockSpec((c_lat, c_cond), const_map),                 # wt_t
                 pl.BlockSpec((c_lat, 1), const_map)]                      # bt

    out_shapes = (
        jax.ShapeDtypeStruct((batch, c_lat, hw_pad), jnp.float32),
        jax.ShapeDtypeStruct((batch, 128), jnp.float32),
    )
    out_specs = [
        pl.BlockSpec((b_tile, c_lat, hw_tile), tile_map),                  # u
        pl.BlockSpec((b_tile, 128), lambda b, h: (b, 0)),                  # ll
    ]

    u_flat, ll_wide = pl.pallas_call(
        kernel,
        out_shape=out_shapes,
        grid=(n_b_groups, n_hw_tiles),
        in_specs=in_specs,
        out_specs=out_specs,
        scratch_shapes=[pltpu.VMEM((b_tile, c_lat, 1), jnp.float32)],
        compiler_params=pltpu.CompilerParams(
            # Batch axis "parallel" (megacore / v7x 2-TC split); HW-tile axis
            # "arbitrary" (sequential ll accumulation).  Note: for batch==1 on
            # v7x one core idles; making the hw axis parallel would require
            # per-tile partial-ll outputs instead of the accumulator.
            dimension_semantics=("parallel", "arbitrary"),
            vmem_limit_bytes=40 * 1024 * 1024),
    )(z_flat, *data_flat, ws_t, bs_c, wt_t, bt_c)

    if pad:
        u_flat = u_flat[:, :, :hw]
    u_nchw = u_flat.reshape(batch, c_lat, height, width)
    ll = ll_wide[:, 0]
    if pad:
        # Padded pixels contribute z=0 (prior: 0) and s=bias (log|det|:
        # sum(bs) per pixel); remove that contribution analytically.
        ll = ll - pad * jnp.sum(bs) / n_dims
    return u_nchw, ll, z_nchw


def _reference_forward(data, params, z_nchw):
    """Pure-JAX reference for correctness checking (NCHW throughout)."""
    ws, bs, wt, bt = params["ws"], params["bs"], params["wt"], params["bt"]
    cond = jnp.concatenate([d.astype(jnp.float32) for d in data], axis=1)
    _, _, height, width = cond.shape
    c_lat = ws.shape[1]
    s = jnp.einsum("bchw,cd->bdhw", cond, ws) + bs[0][None, :, None, None]
    t = jnp.einsum("bchw,cd->bdhw", cond, wt) + bt[0][None, :, None, None]
    u = z_nchw * jnp.exp(s) + t
    n_dims = c_lat * height * width
    prior = (jnp.sum(-0.5 * z_nchw * z_nchw, axis=(1, 2, 3)) / n_dims
             - 0.5 * math.log(2.0 * math.pi))
    logdet = jnp.sum(s, axis=(1, 2, 3)) / n_dims
    return u, prior + logdet


if __name__ == "__main__":
    key = jax.random.PRNGKey(0)
    (k_d0, k_d1, k_z, k_ws, k_wt, k_bs, k_bt,
     k_e0, k_e1, k_ez) = jax.random.split(key, 10)

    batch, c_each, height, width = 2, 2, 16, 16
    c_cond = 2 * c_each   # concat along channels -> 4
    c_lat = 4             # latent-space channels

    params = {
        "ws": 0.1 * jax.random.normal(k_ws, (c_cond, c_lat), jnp.float32),
        "bs": 0.05 * jax.random.normal(k_bs, (1, c_lat), jnp.float32),
        "wt": 0.1 * jax.random.normal(k_wt, (c_cond, c_lat), jnp.float32),
        "bt": 0.05 * jax.random.normal(k_bt, (1, c_lat), jnp.float32),
    }

    # Two conditioning tensors (as in forward(*data)), NCHW.
    data = [jax.random.normal(k_d0, (batch, c_each, height, width), jnp.float32),
            jax.random.normal(k_d1, (batch, c_each, height, width), jnp.float32)]

    # 1) Default tiling: batch folded into the block -> grid (1, 1).
    u, ll, z_used = decorrelator_forward(data, params, k_z)
    u, ll = jax.block_until_ready(u), jax.block_until_ready(ll)
    u_ref, ll_ref = _reference_forward(data, params, z_used)
    assert u.shape == (batch, c_lat, height, width) and ll.shape == (batch,)
    assert jnp.allclose(u, u_ref, atol=1e-5, rtol=1e-5)
    assert jnp.allclose(ll, ll_ref, atol=1e-5, rtol=1e-5)

    # 2) Forced small tiles: grid (2, 2) exercises cross-tile ll accumulation
    #    and per-batch-group accumulator re-init.
    u2, ll2, z2 = decorrelator_forward(data, params, k_z, b_tile=1, hw_tile=128)
    u2, ll2 = jax.block_until_ready(u2), jax.block_until_ready(ll2)
    u2_ref, ll2_ref = _reference_forward(data, params, z2)
    assert jnp.allclose(u2, u2_ref, atol=1e-5, rtol=1e-5)
    assert jnp.allclose(ll2, ll2_ref, atol=1e-5, rtol=1e-5)

    # 3) Non-128-divisible spatial size exercises the lane-padding path and
    #    its analytic log-det correction.
    data3 = [jax.random.normal(k_e0, (batch, c_each, 10, 12), jnp.float32),
             jax.random.normal(k_e1, (batch, c_each, 10, 12), jnp.float32)]
    u3, ll3, z3 = decorrelator_forward(data3, params, k_ez)
    u3, ll3 = jax.block_until_ready(u3), jax.block_until_ready(ll3)
    u3_ref, ll3_ref = _reference_forward(data3, params, z3)
    assert u3.shape == (batch, c_lat, 10, 12) and ll3.shape == (batch,)
    assert jnp.allclose(u3, u3_ref, atol=1e-5, rtol=1e-5)
    assert jnp.allclose(ll3, ll3_ref, atol=1e-5, rtol=1e-5)

    print("KERNEL_OK")
</pallas_src>

<mosaic_0001>
module attributes {stable_mosaic.version = 11 : i64} {
  func.func @_decorrelator_kernel(%arg0: i32, %arg1: i32, %arg2: memref<2x4x256xf32, #tpu.memory_space<vmem>>, %arg3: memref<2x2x256xf32, #tpu.memory_space<vmem>>, %arg4: memref<2x2x256xf32, #tpu.memory_space<vmem>>, %arg5: memref<4x4xf32, #tpu.memory_space<vmem>>, %arg6: memref<4x1xf32, #tpu.memory_space<vmem>>, %arg7: memref<4x4xf32, #tpu.memory_space<vmem>>, %arg8: memref<4x1xf32, #tpu.memory_space<vmem>>, %arg9: memref<2x4x256xf32, #tpu.memory_space<vmem>>, %arg10: memref<2x128xf32, #tpu.memory_space<vmem>>, %arg11: memref<2x4x1xf32, #tpu.memory_space<vmem>>) attributes {dimension_semantics = [#tpu.dimension_semantics<parallel>, #tpu.dimension_semantics<arbitrary>], iteration_bounds = array<i64: 1, 1>, scalar_prefetch = 0 : i64, scratch_operands = 1 : i64, tpu.core_type = #tpu.core_type<tc>, window_params = [{transform_indices = @transform_0, window_bounds = array<i64: 2, 4, 256>}, {transform_indices = @transform_1, window_bounds = array<i64: 2, 2, 256>}, {transform_indices = @transform_2, window_bounds = array<i64: 2, 2, 256>}, {pipeline_mode = #tpu.pipeline_mode<synchronous>, transform_indices = @transform_3, window_bounds = array<i64: 4, 4>}, {pipeline_mode = #tpu.pipeline_mode<synchronous>, transform_indices = @transform_4, window_bounds = array<i64: 4, 1>}, {pipeline_mode = #tpu.pipeline_mode<synchronous>, transform_indices = @transform_5, window_bounds = array<i64: 4, 4>}, {pipeline_mode = #tpu.pipeline_mode<synchronous>, transform_indices = @transform_6, window_bounds = array<i64: 4, 1>}, {transform_indices = @transform_7, window_bounds = array<i64: 2, 4, 256>}, {transform_indices = @transform_8, window_bounds = array<i64: 2, 128>}]} {
    %c0_i32 = arith.constant 0 : i32
    %0 = arith.cmpi eq, %arg1, %c0_i32 : i32
    %1 = arith.extui %0 : i1 to i32
    %c0_i32_0 = arith.constant 0 : i32
    %2 = arith.cmpi ne, %1, %c0_i32_0 : i32
    scf.if %2 {
      %cst_29 = arith.constant 0.000000e+00 : f32
      %82 = vector.broadcast %cst_29 : f32 to vector<2x4x1xf32>
      %c0_30 = arith.constant 0 : index
      %c0_31 = arith.constant 0 : index
      %c0_32 = arith.constant 0 : index
      %83 = vector.load %arg11[%c0_30, %c0_31, %c0_32] : memref<2x4x1xf32, #tpu.memory_space<vmem>>, vector<2x4x1xf32>
      tpu.vector_store %arg11[%c0_30, %c0_31, %c0_32], %82 {strides = array<i32>} : memref<2x4x1xf32, #tpu.memory_space<vmem>>, vector<2x4x1xf32>,
    } else {
    }
    %c0 = arith.constant 0 : index
    %c0_1 = arith.constant 0 : index
    %c0_2 = arith.constant 0 : index
    %3 = vector.load %arg2[%c0, %c0_1, %c0_2] : memref<2x4x256xf32, #tpu.memory_space<vmem>>, vector<2x4x256xf32>
    %c0_3 = arith.constant 0 : index
    %c0_4 = arith.constant 0 : index
    %4 = vector.load %arg5[%c0_3, %c0_4] : memref<4x4xf32, #tpu.memory_space<vmem>>, vector<4x4xf32>
    %c0_5 = arith.constant 0 : index
    %c0_6 = arith.constant 0 : index
    %5 = vector.load %arg7[%c0_5, %c0_6] : memref<4x4xf32, #tpu.memory_space<vmem>>, vector<4x4xf32>
    %c0_7 = arith.constant 0 : index
    %c0_8 = arith.constant 0 : index
    %6 = vector.load %arg6[%c0_7, %c0_8] : memref<4x1xf32, #tpu.memory_space<vmem>>, vector<4x1xf32>
    %c0_9 = arith.constant 0 : index
    %c0_10 = arith.constant 0 : index
    %7 = vector.load %arg8[%c0_9, %c0_10] : memref<4x1xf32, #tpu.memory_space<vmem>>, vector<4x1xf32>
    %c0_11 = arith.constant 0 : index
    %c0_12 = arith.constant 0 : index
    %c0_13 = arith.constant 0 : index
    %8 = vector.load %arg3[%c0_11, %c0_12, %c0_13] : memref<2x2x256xf32, #tpu.memory_space<vmem>>, vector<2x2x256xf32>
    %9 = vector.extract_strided_slice %8 {offsets = [0, 0, 0], sizes = [2, 1, 256], strides = [1, 1, 1]} : vector<2x2x256xf32> to vector<2x1x256xf32>
    %10 = vector.shape_cast %9 : vector<2x1x256xf32> to vector<2x1x256xf32>
    %11 = vector.broadcast %10 : vector<2x1x256xf32> to vector<2x4x256xf32>
    %12 = vector.extract_strided_slice %4 {offsets = [0, 0], sizes = [4, 1], strides = [1, 1]} : vector<4x4xf32> to vector<4x1xf32>
    %13 = vector.shape_cast %12 : vector<4x1xf32> to vector<1x4x1xf32>
    %14 = vector.extract_strided_slice %5 {offsets = [0, 0], sizes = [4, 1], strides = [1, 1]} : vector<4x4xf32> to vector<4x1xf32>
    %15 = vector.shape_cast %14 : vector<4x1xf32> to vector<1x4x1xf32>
    %16 = vector.broadcast %13 : vector<1x4x1xf32> to vector<2x4x256xf32>
    %17 = arith.mulf %11, %16 : vector<2x4x256xf32>
    %18 = vector.broadcast %15 : vector<1x4x1xf32> to vector<2x4x256xf32>
    %19 = arith.mulf %11, %18 : vector<2x4x256xf32>
    %20 = vector.extract_strided_slice %8 {offsets = [0, 1, 0], sizes = [2, 1, 256], strides = [1, 1, 1]} : vector<2x2x256xf32> to vector<2x1x256xf32>
    %21 = vector.shape_cast %20 : vector<2x1x256xf32> to vector<2x1x256xf32>
    %22 = vector.broadcast %21 : vector<2x1x256xf32> to vector<2x4x256xf32>
    %23 = vector.extract_strided_slice %4 {offsets = [0, 1], sizes = [4, 1], strides = [1, 1]} : vector<4x4xf32> to vector<4x1xf32>
    %24 = vector.shape_cast %23 : vector<4x1xf32> to vector<1x4x1xf32>
    %25 = vector.extract_strided_slice %5 {offsets = [0, 1], sizes = [4, 1], strides = [1, 1]} : vector<4x4xf32> to vector<4x1xf32>
    %26 = vector.shape_cast %25 : vector<4x1xf32> to vector<1x4x1xf32>
    %27 = vector.broadcast %24 : vector<1x4x1xf32> to vector<2x4x256xf32>
    %28 = arith.mulf %22, %27 : vector<2x4x256xf32>
    %29 = arith.addf %17, %28 : vector<2x4x256xf32>
    %30 = vector.broadcast %26 : vector<1x4x1xf32> to vector<2x4x256xf32>
    %31 = arith.mulf %22, %30 : vector<2x4x256xf32>
    %32 = arith.addf %19, %31 : vector<2x4x256xf32>
    %c0_14 = arith.constant 0 : index
    %c0_15 = arith.constant 0 : index
    %c0_16 = arith.constant 0 : index
    %33 = vector.load %arg4[%c0_14, %c0_15, %c0_16] : memref<2x2x256xf32, #tpu.memory_space<vmem>>, vector<2x2x256xf32>
    %34 = vector.extract_strided_slice %33 {offsets = [0, 0, 0], sizes = [2, 1, 256], strides = [1, 1, 1]} : vector<2x2x256xf32> to vector<2x1x256xf32>
    %35 = vector.shape_cast %34 : vector<2x1x256xf32> to vector<2x1x256xf32>
    %36 = vector.broadcast %35 : vector<2x1x256xf32> to vector<2x4x256xf32>
    %37 = vector.extract_strided_slice %4 {offsets = [0, 2], sizes = [4, 1], strides = [1, 1]} : vector<4x4xf32> to vector<4x1xf32>
    %38 = vector.shape_cast %37 : vector<4x1xf32> to vector<1x4x1xf32>
    %39 = vector.extract_strided_slice %5 {offsets = [0, 2], sizes = [4, 1], strides = [1, 1]} : vector<4x4xf32> to vector<4x1xf32>
    %40 = vector.shape_cast %39 : vector<4x1xf32> to vector<1x4x1xf32>
    %41 = vector.broadcast %38 : vector<1x4x1xf32> to vector<2x4x256xf32>
    %42 = arith.mulf %36, %41 : vector<2x4x256xf32>
    %43 = arith.addf %29, %42 : vector<2x4x256xf32>
    %44 = vector.broadcast %40 : vector<1x4x1xf32> to vector<2x4x256xf32>
    %45 = arith.mulf %36, %44 : vector<2x4x256xf32>
    %46 = arith.addf %32, %45 : vector<2x4x256xf32>
    %47 = vector.extract_strided_slice %33 {offsets = [0, 1, 0], sizes = [2, 1, 256], strides = [1, 1, 1]} : vector<2x2x256xf32> to vector<2x1x256xf32>
    %48 = vector.shape_cast %47 : vector<2x1x256xf32> to vector<2x1x256xf32>
    %49 = vector.broadcast %48 : vector<2x1x256xf32> to vector<2x4x256xf32>
    %50 = vector.extract_strided_slice %4 {offsets = [0, 3], sizes = [4, 1], strides = [1, 1]} : vector<4x4xf32> to vector<4x1xf32>
    %51 = vector.shape_cast %50 : vector<4x1xf32> to vector<1x4x1xf32>
    %52 = vector.extract_strided_slice %5 {offsets = [0, 3], sizes = [4, 1], strides = [1, 1]} : vector<4x4xf32> to vector<4x1xf32>
    %53 = vector.shape_cast %52 : vector<4x1xf32> to vector<1x4x1xf32>
    %54 = vector.broadcast %51 : vector<1x4x1xf32> to vector<2x4x256xf32>
    %55 = arith.mulf %49, %54 : vector<2x4x256xf32>
    %56 = arith.addf %43, %55 : vector<2x4x256xf32>
    %57 = vector.broadcast %53 : vector<1x4x1xf32> to vector<2x4x256xf32>
    %58 = arith.mulf %49, %57 : vector<2x4x256xf32>
    %59 = arith.addf %46, %58 : vector<2x4x256xf32>
    %60 = vector.shape_cast %6 : vector<4x1xf32> to vector<1x4x1xf32>
    %61 = vector.broadcast %60 : vector<1x4x1xf32> to vector<2x4x256xf32>
    %62 = arith.addf %56, %61 : vector<2x4x256xf32>
    %63 = vector.shape_cast %7 : vector<4x1xf32> to vector<1x4x1xf32>
    %64 = vector.broadcast %63 : vector<1x4x1xf32> to vector<2x4x256xf32>
    %65 = arith.addf %59, %64 : vector<2x4x256xf32>
    %66 = math.exp %62 : vector<2x4x256xf32>
    %67 = arith.mulf %3, %66 : vector<2x4x256xf32>
    %68 = arith.addf %67, %65 : vector<2x4x256xf32>
    %c0_17 = arith.constant 0 : index
    %c0_18 = arith.constant 0 : index
    %c0_19 = arith.constant 0 : index
    %69 = vector.load %arg9[%c0_17, %c0_18, %c0_19] : memref<2x4x256xf32, #tpu.memory_space<vmem>>, vector<2x4x256xf32>
    tpu.vector_store %arg9[%c0_17, %c0_18, %c0_19], %68 {strides = array<i32>} : memref<2x4x256xf32, #tpu.memory_space<vmem>>, vector<2x4x256xf32>,
    %c0_20 = arith.constant 0 : index
    %c0_21 = arith.constant 0 : index
    %c0_22 = arith.constant 0 : index
    %70 = vector.load %arg11[%c0_20, %c0_21, %c0_22] : memref<2x4x1xf32, #tpu.memory_space<vmem>>, vector<2x4x1xf32>
    %cst = arith.constant 5.000000e-01 : f32
    %71 = vector.broadcast %cst : f32 to vector<2x4x256xf32>
    %72 = arith.mulf %71, %3 : vector<2x4x256xf32>
    %73 = arith.mulf %72, %3 : vector<2x4x256xf32>
    %74 = arith.subf %62, %73 : vector<2x4x256xf32>
    %cst_23 = arith.constant dense<0.000000e+00> : vector<2x4xf32>
    %75 = vector.multi_reduction <add>, %74, %cst_23 [2] : vector<2x4x256xf32> to vector<2x4xf32>
    %76 = vector.shape_cast %75 : vector<2x4xf32> to vector<2x4x1xf32>
    %77 = arith.addf %70, %76 : vector<2x4x1xf32>
    %c0_24 = arith.constant 0 : index
    %c0_25 = arith.constant 0 : index
    %c0_26 = arith.constant 0 : index
    %78 = vector.load %arg11[%c0_24, %c0_25, %c0_26] : memref<2x4x1xf32, #tpu.memory_space<vmem>>, vector<2x4x1xf32>
    tpu.vector_store %arg11[%c0_24, %c0_25, %c0_26], %77 {strides = array<i32>} : memref<2x4x1xf32, #tpu.memory_space<vmem>>, vector<2x4x1xf32>,
    %c0_i32_27 = arith.constant 0 : i32
    %79 = arith.cmpi eq, %arg1, %c0_i32_27 : i32
    %80 = arith.extui %79 : i1 to i32
    %c0_i32_28 = arith.constant 0 : i32
    %81 = arith.cmpi ne, %80, %c0_i32_28 : i32
    scf.if %81 {
      %c0_29 = arith.constant 0 : index
      %c0_30 = arith.constant 0 : index
      %c0_31 = arith.constant 0 : index
      %82 = vector.load %arg11[%c0_29, %c0_30, %c0_31] : memref<2x4x1xf32, #tpu.memory_space<vmem>>, vector<2x4x1xf32>
      %cst_32 = arith.constant dense<0.000000e+00> : vector<2x1xf32>
      %83 = vector.multi_reduction <add>, %82, %cst_32 [1] : vector<2x4x1xf32> to vector<2x1xf32>
      %cst_33 = arith.constant 1.024000e+03 : f32
      %84 = vector.broadcast %cst_33 : f32 to vector<2x1xf32>
      %85 = arith.divf %83, %84 : vector<2x1xf32>
      %cst_34 = arith.constant 0.918938517 : f32
      %86 = vector.broadcast %cst_34 : f32 to vector<2x1xf32>
      %87 = arith.subf %85, %86 : vector<2x1xf32>
      %88 = vector.shape_cast %87 : vector<2x1xf32> to vector<2x1xf32>
      %89 = vector.broadcast %88 : vector<2x1xf32> to vector<2x128xf32>
      %c0_35 = arith.constant 0 : index
      %c0_36 = arith.constant 0 : index
      %90 = vector.load %arg10[%c0_35, %c0_36] : memref<2x128xf32, #tpu.memory_space<vmem>>, vector<2x128xf32>
      tpu.vector_store %arg10[%c0_35, %c0_36], %89 {strides = array<i32>} : memref<2x128xf32, #tpu.memory_space<vmem>>, vector<2x128xf32>,
    } else {
    }
    return
  }
  func.func @transform_0(%arg0: i32, %arg1: i32) -> (i32, i32, i32) {
    %c0_i32 = arith.constant 0 : i32
    %c0_i32_0 = arith.constant 0 : i32
    return %arg0, %c0_i32, %arg1 : i32, i32, i32
  }
  func.func @transform_1(%arg0: i32, %arg1: i32) -> (i32, i32, i32) {
    %c0_i32 = arith.constant 0 : i32
    %c0_i32_0 = arith.constant 0 : i32
    return %arg0, %c0_i32, %arg1 : i32, i32, i32
  }
  func.func @transform_2(%arg0: i32, %arg1: i32) -> (i32, i32, i32) {
    %c0_i32 = arith.constant 0 : i32
    %c0_i32_0 = arith.constant 0 : i32
    return %arg0, %c0_i32, %arg1 : i32, i32, i32
  }
  func.func @transform_3(%arg0: i32, %arg1: i32) -> (i32, i32) {
    %c0_i32 = arith.constant 0 : i32
    %c0_i32_0 = arith.constant 0 : i32
    %c0_i32_1 = arith.constant 0 : i32
    return %c0_i32, %c0_i32_0 : i32, i32
  }
  func.func @transform_4(%arg0: i32, %arg1: i32) -> (i32, i32) {
    %c0_i32 = arith.constant 0 : i32
    %c0_i32_0 = arith.constant 0 : i32
    %c0_i32_1 = arith.constant 0 : i32
    return %c0_i32, %c0_i32_0 : i32, i32
  }
  func.func @transform_5(%arg0: i32, %arg1: i32) -> (i32, i32) {
    %c0_i32 = arith.constant 0 : i32
    %c0_i32_0 = arith.constant 0 : i32
    %c0_i32_1 = arith.constant 0 : i32
    return %c0_i32, %c0_i32_0 : i32, i32
  }
  func.func @transform_6(%arg0: i32, %arg1: i32) -> (i32, i32) {
    %c0_i32 = arith.constant 0 : i32
    %c0_i32_0 = arith.constant 0 : i32
    %c0_i32_1 = arith.constant 0 : i32
    return %c0_i32, %c0_i32_0 : i32, i32
  }
  func.func @transform_7(%arg0: i32, %arg1: i32) -> (i32, i32, i32) {
    %c0_i32 = arith.constant 0 : i32
    %c0_i32_0 = arith.constant 0 : i32
    return %arg0, %c0_i32, %arg1 : i32, i32, i32
  }
  func.func @transform_8(%arg0: i32, %arg1: i32) -> (i32, i32) {
    %c0_i32 = arith.constant 0 : i32
    %c0_i32_0 = arith.constant 0 : i32
    return %arg0, %c0_i32 : i32, i32
  }
}

</mosaic_0001>

<bundles_post_ra>
// kernel: tpu_custom_call.1
= control target key start
LH: loop header
LB: loop body
LE: loop exit
PB: predicated region body
PF: predicated region fallthrough
CT: control target
= control target key end

     0   :  { %14 = vsyncpa [#allocation4], 0  ;;  %s817_s0 = inlined_call_operand.hbm [shape: f32[2,4,256], index: 0, kind: input, shape index: {}]   ;;  %s818_s1 = inlined_call_operand.vmem [shape: f32[2,2,256], index: 1, kind: input, shape index: {}]   ;;  %s819_s2 = inlined_call_operand.hbm [shape: f32[2,2,256], index: 2, kind: input, shape index: {}]   ;;  %s820_s3 = inlined_call_operand.hbm [shape: f32[4,4], index: 3, kind: input, shape index: {}]   ;;  %s821_s4 = inlined_call_operand.vmem [shape: f32[4,1], index: 4, kind: input, shape index: {}]   ;;  %s822_s5 = inlined_call_operand.hbm [shape: f32[4,4], index: 5, kind: input, shape index: {}]   ;;  %s823_s6 = inlined_call_operand.vmem [shape: f32[4,1], index: 6, kind: input, shape index: {}]   ;;  %s824_s7 = inlined_call_operand.hbm [shape: f32[2,4,256], index: 7, kind: output, shape index: {0}]   ;;  %s825_s8 = inlined_call_operand.hbm [shape: f32[2,128], index: 8, kind: output, shape index: {1}]  }
   0x1   :  { %15 = vsyncpa [#allocation7], 0 }
   0x2   :  { %16 = vsyncpa [#allocation10], 0 }
   0x3   :  { %17 = vsyncpa [#allocation5], 0  ;;  %s38_s29 = sshll.u32 %s819_s2, 4  ;;  %s39_s29 = int_to_ptr.hbm [resolvable:$true] %s38_s29 }
   0x4   :  { %18 = vsyncpa [#allocation13], 0  ;;  %s612_s30 = smov [#allocation6]   ;;  %s23_s12 = sshll.u32 %s817_s0, 4  ;;  %s24_s12 = int_to_ptr.hbm [resolvable:$true] %s23_s12 }
   0x5   :  { %s40_s9 = sshll.u32 %s612_s30, 4  ;;  %s613_s13 = smov 64   ;;  %s41_s9 = int_to_ptr.vmem [resolvable:$true] %s40_s9 }
   0x6   :  { %s614_s14 = smov 4   ;;  %s615_s15 = smov [#allocation3]  }
   0x7   :  { %46 = dma.hbm_to_vmem [thread:$0]  %s39_s29, 128, %s41_s9, [#allocation7], %s613_s13, %s613_s13, %s614_s14  }
   0x8   :  { %s25_s16 = sshll.u32 %s615_s15, 4  ;;  %s616_s17 = smov 128   ;;  %s26_s16 = int_to_ptr.vmem [resolvable:$true] %s25_s16 }
   0x9   :  { %s617_s18 = smov 8   ;;  %s52_s20 = sshll.u32 %s820_s3, 4  ;;  %s53_s20 = int_to_ptr.hbm [resolvable:$true] %s52_s20 }
   0xa   :  { %31 = dma.hbm_to_vmem [thread:$0]  %s24_s12, 256, %s26_s16, [#allocation4], %s616_s17, %s616_s17, %s617_s18  }
   0xb   :  { %s618_s21 = smov [#allocation8]   ;;  %s65_s24 = sshll.u32 %s822_s5, 4  ;;  %s66_s24 = int_to_ptr.hbm [resolvable:$true] %s65_s24 }
   0xc   :  { %s54_s0 = sshll.u32 %s618_s21, 4  ;;  %s619_s25 = smov [#allocation9]   ;;  %s55_s0 = int_to_ptr.vmem [resolvable:$true] %s54_s0 }
   0xd   :  { %57 = dma.hbm_to_vmem [thread:$0]  %s53_s20, 64, %s55_s0, [#allocation7]  }
   0xe   :  { %s67_s26 = sshll.u32 %s619_s25, 4  ;;  %s68_s26 = int_to_ptr.vmem [resolvable:$true] %s67_s26 }
   0xf   :  { %70 = dma.hbm_to_vmem [thread:$0]  %s66_s24, 64, %s68_s26, [#allocation10]  }
  0x10   :  { %602 = dma.done.wait [#allocation4], 256  }
  0x11   :  { %603 = vsyncadd [#allocation4], 4294967040 }
  0x12   :  { %604 = dma.done.wait [#allocation7], 192  }
  0x13   :  { %605 = vsyncadd [#allocation7], 4294967104 }
  0x14   :  { %606 = dma.done.wait [#allocation10], 64  }
  0x15   :  { %607 = vsyncadd [#allocation10], 4294967232  ;;  %v620_v0 = vmov 0   ;;  %v621_v1 = vmov 2   ;;  %v98_v2 = vld [vmem:[#allocation8] sm:$0xf] }
  0x16   :  { %436 = vset.pattern.permute.xlu0 %v620_v0  ;;  %438 = vset.pattern.permute.xlu1 %v621_v1  ;;  %v100_v3 = vld [vmem:[%s821_s4] sm:$0xf]  ;;  %v622_v4 = vmov 1   ;;  %v623_v5 = vmov 3   ;;  %v696_v6 = vld [vmem:[#allocation3 + $0x8] sm:$0xff]  ;;  %v698_v7 = vld [vmem:[#allocation3] sm:$0xff] }
  0x17   :  { %440 = vset.pattern.permute.xlu2 %v620_v0  ;;  %120 = vperm.xlu0 %436, %v98_v2   ;;  %v304_v8 = vmul.f32 0.5, %v696_v6  ;;  %v303_v9 = vmul.f32 0.5, %v698_v7  ;;  %v102_v12 = vld [vmem:[%s818_s1] sm:$0xf]  ;;  %v103_v13 = vld [vmem:[%s818_s1 + $0x4] sm:$0xf] }
  0x18   :  { %189 = vperm.xlu1 %438, %v98_v2   ;;  %250 = vperm.xlu2 %440, %v100_v3   ;;  %v172_v14 = vld [vmem:[#allocation6] sm:$0xf]  ;;  %v173_v15 = vld [vmem:[#allocation6 + $0x4] sm:$0xf]  ;;  %v710_v16 = vld [vmem:[#allocation9] sm:$0xf] }
  0x19   :  { %v306_v10 = vmul.f32 %v304_v8, %v696_v6  ;;  %v305_v11 = vmul.f32 %v303_v9, %v698_v7  ;;  %v106_v17 = vperm.slane %v102_v12, 0  ;;  %v107_v18 = vperm.slane %v102_v12, 2  ;;  %s387_s12 = sshll.u32 %s824_s7, 4  ;;  %s627_s13 = smov [#allocation12]   ;;  %s388_s12 = int_to_ptr.hbm [resolvable:$true] %s387_s12 }
  0x1a   :  { %v108_v19 = vperm.slane %v103_v13, 0  ;;  %v109_v20 = vperm.slane %v103_v13, 2  ;;  %v176_v23 = vperm.slane %v172_v14, 0  ;;  %v177_v24 = vperm.slane %v172_v14, 2  ;;  %s399_s7 = sshll.u32 %s627_s13, 4  ;;  %s401_s16 = sshll.u32 %s825_s8, 4  ;;  %s400_s7 = int_to_ptr.vmem [resolvable:$true] %s399_s7  ;;  %s402_s16 = int_to_ptr.hbm [resolvable:$true] %s401_s16 }
  0x1b   :  { %313 = vst [vmem:[#allocation1 + $0x10] ss:$2 sm:$0xff] %v306_v10  ;;  %v178_v25 = vperm.slane %v173_v15, 0  ;;  %v179_v26 = vperm.slane %v173_v15, 2  ;;  %v136_v27 = vperm.slane %v102_v12, 1  ;;  %v137_v28 = vperm.slane %v102_v12, 3 }
  0x1c   :  { %309 = vst [vmem:[#allocation1] ss:$2 sm:$0xff] %v305_v11  ;;  %v138_v29 = vperm.slane %v103_v13, 1  ;;  %v139_v30 = vperm.slane %v103_v13, 3  ;;  %v212_v31 = vperm.slane %v172_v14, 1  ;;  %v213_v32 = vperm.slane %v172_v14, 3 }
  0x1d   :  { %v214_v33 = vperm.slane %v173_v15, 1  ;;  %v215_v34 = vperm.slane %v173_v15, 3  ;;  %v713_v35 = vperm.slane %v106_v17, 0  ;;  %v715_v36 = vperm.slane %v107_v18, 0 }
  0x1e   :  { %v717_v37 = vperm.slane %v108_v19, 0  ;;  %v719_v38 = vperm.slane %v109_v20, 0  ;;  %v721_v39 = vperm.slane %v176_v23, 0  ;;  %v723_v40 = vperm.slane %v177_v24, 0 }
  0x1f   :  { %437 = vset.pattern.permute.xlu0 %v622_v4  ;;  %v725_v41 = vperm.slane %v178_v25, 0  ;;  %v727_v42 = vperm.slane %v179_v26, 0  ;;  %v729_v43 = vperm.slane %v136_v27, 1  ;;  %v731_v44 = vperm.slane %v137_v28, 1 }
  0x20   :  { %439 = vset.pattern.permute.xlu1 %v623_v5  ;;  %149 = vperm.xlu0 %437, %v98_v2   ;;  %v733_v45 = vperm.slane %v138_v29, 1  ;;  %v735_v46 = vperm.slane %v139_v30, 1  ;;  %v737_v47 = vperm.slane %v212_v31, 1  ;;  %v739_v48 = vperm.slane %v213_v32, 1 }
  0x21   :  { %225 = vperm.xlu1 %439, %v98_v2   ;;  %443 = vset.pattern.permute.xlu2 %v621_v1  ;;  %v741_v49 = vperm.slane %v214_v33, 1  ;;  %v743_v50 = vperm.slane %v215_v34, 1  ;;  %vm280_vm0 = vcmask 1043456   ;;  %vm93_vm1 = vcmask 3072  }
  0x22   :  { %v314_v23 = vld.sshfl [vmem:[#allocation1 + $0x10] sm:$0xff pattern:$0x75316420]  ;;  %v315_v24 = vld.sshfl [vmem:[#allocation1 + $0x18] sm:$0xff pattern:$0x75316420] }
  0x23   :  { %v310_v29 = vld.sshfl [vmem:[#allocation1] sm:$0xff pattern:$0x75316420]  ;;  %v311_v30 = vld.sshfl [vmem:[#allocation1 + $0x8] sm:$0xff pattern:$0x75316420] }
  0x24   :  { %vm377_vm3 = vcmask 1041409  }
  0x28   :  { %441 = vset.pattern.permute.xlu0 %v620_v0 }
  0x29   :  { %445 = vset.pattern.permute.xlu1 %v620_v0  ;;  %129 = vperm.xlu0 %441, %v710_v16  }
  0x31   :  { %442 = vset.pattern.permute.xlu0 %v622_v4 }
  0x32   :  { %161 = vperm.xlu0 %442, %v710_v16  }
  0x3a   :  { %444 = vset.pattern.permute.xlu0 %v623_v5  ;;  %v624_v5 = vmov 0.0  }
  0x3b   :  { %237 = vperm.xlu0 %444, %v710_v16   ;;  %95 = vst.msk [vmem:[#allocation2 + $0x4] sm:$0xf] %vm93_vm1, %v624_v5 }
  0x3c   :  { %94 = vst.msk [vmem:[#allocation2] sm:$0xf] %vm93_vm1, %v624_v5 }
  0x43   :  { %446 = vset.pattern.permute.xlu0 %v620_v0 }
  0x72   :  { %v251_v18 = vpop.permute.xlu2 %250 }
  0x89   :  { %v121_v21 = vpop.permute.xlu0 %120 }
  0x8a   :  { %v190_v22 = vpop.permute.xlu1 %189  ;;  %v123_v51 = vmul.f32 %v121_v21, %v713_v35  ;;  %v124_v52 = vmul.f32 %v121_v21, %v715_v36  ;;  %v125_v53 = vmul.f32 %v121_v21, %v717_v37  ;;  %v126_v54 = vmul.f32 %v121_v21, %v719_v38 }
  0x8b   :  { %v192_v55 = vmul.f32 %v190_v22, %v721_v39  ;;  %v193_v56 = vmul.f32 %v190_v22, %v723_v40  ;;  %v194_v57 = vmul.f32 %v190_v22, %v725_v41  ;;  %v195_v58 = vmul.f32 %v190_v22, %v727_v42 }
  0x92   :  { %v150_v59 = vpop.permute.xlu0 %149 }
  0x93   :  { %v226_v60 = vpop.permute.xlu1 %225  ;;  %v152_v61 = vmul.f32 %v150_v59, %v729_v43  ;;  %v153_v62 = vmul.f32 %v150_v59, %v731_v44  ;;  %v154_v63 = vmul.f32 %v150_v59, %v733_v45  ;;  %v155_v1 = vmul.f32 %v150_v59, %v735_v46 }
  0x94   :  { %v228_v2 = vmul.f32 %v226_v60, %v737_v47  ;;  %v229_v3 = vmul.f32 %v226_v60, %v739_v48  ;;  %v230_v4 = vmul.f32 %v226_v60, %v741_v49  ;;  %v231_v8 = vmul.f32 %v226_v60, %v743_v50 }
  0x95   :  { %v156_v9 = vadd.f32 %v152_v61, %v123_v51  ;;  %v157_v10 = vadd.f32 %v153_v62, %v124_v52  ;;  %v158_v11 = vadd.f32 %v154_v63, %v125_v53  ;;  %v159_v12 = vadd.f32 %v155_v1, %v126_v54 }
  0x97   :  { %v196_v13 = vadd.f32 %v192_v55, %v156_v9  ;;  %v197_v14 = vadd.f32 %v193_v56, %v157_v10  ;;  %v198_v15 = vadd.f32 %v194_v57, %v158_v11  ;;  %v199_v17 = vadd.f32 %v195_v58, %v159_v12  ;;  %v101_v11 = vld [vmem:[%s823_s6] sm:$0xf]  ;;  %s626_s6 = smov [#allocation11]  }
  0x98   :  { %s385_s9 = sshll.u32 %s626_s6, 4  ;;  %s386_s9 = int_to_ptr.vmem [resolvable:$true] %s385_s9 }
  0x99   :  { %v232_v19 = vadd.f32 %v228_v2, %v196_v13  ;;  %v233_v20 = vadd.f32 %v229_v3, %v197_v14  ;;  %v234_v21 = vadd.f32 %v230_v4, %v198_v15  ;;  %v235_v22 = vadd.f32 %v231_v8, %v199_v17  ;;  %v302_v13 = vld [vmem:[#allocation2 + $0x4] sm:$0xf]  ;;  %v301_v14 = vld [vmem:[#allocation2] sm:$0xf] }
  0x9a   :  { %v625_v15 = vmov 1024.0  }
  0x9b   :  { %v253_v25 = vadd.f32 %v251_v18, %v232_v19  ;;  %v254_v26 = vadd.f32 %v251_v18, %v233_v20  ;;  %v255_v27 = vadd.f32 %v251_v18, %v234_v21  ;;  %v256_v28 = vadd.f32 %v251_v18, %v235_v22  ;;  %v130_v12 = vpop.permute.xlu0 %129 }
  0x9c   :  { %v133_v21 = vmul.f32 %v130_v12, %v715_v36 }
  0x9d   :  { %v266_v31 = vmul.f32 1.442695, %v253_v25  ;;  %v268_v32 = vmul.f32 1.442695, %v254_v26  ;;  %v322_v33 = vsub.f32 %v255_v27, %v314_v23  ;;  %v272_v34 = vmul.f32 1.442695, %v256_v28 }
  0x9e   :  { %v323_v51 = vsub.f32 %v256_v28, %v315_v24  ;;  %v320_v52 = vsub.f32 %v253_v25, %v310_v29  ;;  %v321_v53 = vsub.f32 %v254_v26, %v311_v30  ;;  %v270_v54 = vmul.f32 1.442695, %v255_v27 }
  0x9f   :  { %v329_v55 = vsel %vm280_vm0, %v322_v33, 0.0  ;;  %448 = vpow2.f32 %v268_v32  ;;  %v134_v24 = vmul.f32 %v130_v12, %v717_v37  ;;  %v135_v25 = vmul.f32 %v130_v12, %v719_v38 }
  0xa0   :  { %v330_v56 = vsel %vm280_vm0, %v323_v51, 0.0  ;;  %v324_v57 = vsel %vm280_vm0, %v320_v52, 0.0  ;;  %v325_v58 = vsel %vm280_vm0, %v321_v53, 0.0  ;;  %450 = vpow2.f32 %v266_v31 }
  0xa1   :  { %v331_v59 = vadd.f32 %v330_v56, %v329_v55  ;;  %v326_v60 = vadd.f32 %v325_v58, %v324_v57  ;;  %452 = vpow2.f32 %v272_v34 }
  0xa2   :  { %454 = vpow2.f32 %v270_v54 }
  0xa3   :  { %332 = vadd.xlane.f32.xlu1 %v331_v59  ;;  %327 = vadd.xlane.f32.xlu2 %v326_v60  ;;  %456 = vrcp.f32 %v625_v15 }
  0xa5   :  { %v449_v61 = vpop.eup %448 }
  0xa6   :  { %v451_v62 = vpop.eup %450  ;;  %v278_v63 = vrot.slane %v449_v61, 4 }
  0xa7   :  { %v453_v1 = vpop.eup %452 }
  0xa8   :  { %v279_v2 = vrot.slane %v453_v1, 4  ;;  %v281_v3 = vsel %vm280_vm0, %v451_v62, %v278_v63  ;;  %v455_v4 = vpop.eup %454 }
  0xa9   :  { %v773_v8 = vmul.f32 %v281_v3, %v698_v7  ;;  %v457_v20 = vpop.eup %456 }
  0xaa   :  { %v282_v9 = vsel %vm280_vm0, %v455_v4, %v279_v2  ;;  %v359_v23 = vmul.f32 1024.0, %v457_v20  ;;  %vm363_vm2 = vweird.f32 %v457_v20 }
  0xab   :  { %v777_v10 = vmul.f32 %v282_v9, %v696_v6  ;;  %v162_v6 = vpop.permute.xlu0 %161 }
  0xac   :  { %v165_v22 = vmul.f32 %v162_v6, %v731_v44  ;;  %v166_v26 = vmul.f32 %v162_v6, %v733_v45  ;;  %v167_v27 = vmul.f32 %v162_v6, %v735_v46 }
  0xae   :  { %v169_v31 = vadd.f32 %v165_v22, %v133_v21  ;;  %v170_v36 = vadd.f32 %v166_v26, %v134_v24  ;;  %v171_v33 = vadd.f32 %v167_v27, %v135_v25 }
  0xbb   :  { %201 = vperm.xlu2 %443, %v710_v16   ;;  %v132_v16 = vmul.f32 %v130_v12, %v713_v35  ;;  %v360_v35 = vsub.f32 1.0, %v359_v23 }
  0xbc   :  { %259 = vperm.xlu1 %445, %v101_v11  }
  0xbd   :  { %v361_v54 = vmul.f32 %v457_v20, %v360_v35 }
  0xc3   :  { %447 = vset.pattern.permute.xlu2 %v620_v0  ;;  %v164_v0 = vmul.f32 %v162_v6, %v729_v43  ;;  %v238_v43 = vpop.permute.xlu0 %237 }
  0xc4   :  { %v240_v53 = vmul.f32 %v238_v43, %v737_v47  ;;  %v241_v5 = vmul.f32 %v238_v43, %v739_v48  ;;  %v242_v55 = vmul.f32 %v238_v43, %v741_v49  ;;  %v243_v56 = vmul.f32 %v238_v43, %v743_v50 }
  0xc5   :  { %v168_v30 = vadd.f32 %v164_v0, %v132_v16 }
 0x116   :  { %v333_v7 = vpop.xlane.xlu1 %332  ;;  %v328_v17 = vpop.xlane.xlu2 %327 }
 0x117   :  { %v335_v18 = vadd.f32 %v333_v7, %v302_v13  ;;  %v334_v19 = vadd.f32 %v328_v17, %v301_v14 }
 0x119   :  { %338 = vst.msk [vmem:[#allocation2 + $0x4] sm:$0xf] %vm93_vm1, %v335_v18 }
 0x11a   :  { %337 = vst.msk [vmem:[#allocation2] sm:$0xf] %vm93_vm1, %v334_v19 }
 0x11e   :  { %v202_v28 = vpop.permute.xlu2 %201 }
 0x11f   :  { %v204_v37 = vmul.f32 %v202_v28, %v721_v39  ;;  %v205_v38 = vmul.f32 %v202_v28, %v723_v40  ;;  %v206_v45 = vmul.f32 %v202_v28, %v725_v41  ;;  %v207_v46 = vmul.f32 %v202_v28, %v727_v42 }
 0x120   :  { %v343_v29 = vld [vmem:[#allocation2 + $0x4] sm:$0xf]  ;;  %v362_v42 = vadd.f32 %v457_v20, %v361_v54 }
 0x121   :  { %v342_v32 = vld [vmem:[#allocation2] sm:$0xf]  ;;  %v351_v44 = vsel %vm93_vm1, %v343_v29, 0.0  ;;  %v208_v39 = vadd.f32 %v204_v37, %v168_v30  ;;  %v209_v59 = vadd.f32 %v205_v38, %v169_v31  ;;  %v210_v40 = vadd.f32 %v206_v45, %v170_v36 }
 0x122   :  { %v344_v34 = vsel %vm93_vm1, %v342_v32, 0.0  ;;  %v352_v51 = vrot.slane %v351_v44, 4  ;;  %v211_v60 = vadd.f32 %v207_v46, %v171_v33  ;;  %v364_v4 = vsel %vm363_vm2, %v457_v20, %v362_v42 }
 0x123   :  { %v345_v52 = vrot.slane %v344_v34, 4  ;;  %v244_v47 = vadd.f32 %v240_v53, %v208_v39  ;;  %v245_v1 = vadd.f32 %v241_v5, %v209_v59  ;;  %v246_v48 = vadd.f32 %v242_v55, %v210_v40 }
 0x124   :  { %v353_v57 = vadd.f32 %v352_v51, %v351_v44  ;;  %v247_v2 = vadd.f32 %v243_v56, %v211_v60 }
 0x125   :  { %v346_v58 = vadd.f32 %v345_v52, %v344_v34 }
 0x126   :  { %v354_v41 = vrot.slane %v353_v57, 2 }
 0x127   :  { %v347_v61 = vrot.slane %v346_v58, 2 }
 0x128   :  { %v355_v62 = vadd.f32 %v354_v41, %v353_v57 }
 0x129   :  { %v348_v63 = vadd.f32 %v347_v61, %v346_v58 }
 0x12a   :  { %v356_v3 = vrot.slane %v355_v62, 1 }
 0x12b   :  { %v349_v49 = vrot.slane %v348_v63, 1 }
 0x12c   :  { %v357_v9 = vadd.f32 %v356_v3, %v355_v62 }
 0x12d   :  { %v350_v11 = vadd.f32 %v349_v49, %v348_v63 }
 0x12e   :  { %v260_v50 = vpop.permute.xlu1 %259  ;;  %v366_v7 = vmul.f32 %v364_v4, %v357_v9 }
 0x12f   :  { %v262_v12 = vadd.f32 %v260_v50, %v244_v47  ;;  %v263_v13 = vadd.f32 %v260_v50, %v245_v1  ;;  %v264_v14 = vadd.f32 %v260_v50, %v246_v48  ;;  %v265_v15 = vadd.f32 %v260_v50, %v247_v2 }
 0x130   :  { %v365_v17 = vmul.f32 %v364_v4, %v350_v11  ;;  %v419_v6 = vadd.f32 -0.9189385, %v366_v7 }
 0x131   :  { %v291_v18 = vrot.slane %v263_v13, 4  ;;  %v292_v19 = vrot.slane %v265_v15, 4 }
 0x132   :  { %v418_v16 = vadd.f32 -0.9189385, %v365_v17  ;;  %375 = vperm.xlu2 %447, %v419_v6  }
 0x133   :  { %v293_v20 = vsel %vm280_vm0, %v262_v12, %v291_v18  ;;  %v294_v21 = vsel %vm280_vm0, %v264_v14, %v292_v19 }
 0x134   :  { %371 = vperm.xlu0 %446, %v418_v16   ;;  %v297_v0 = vadd.f32 %v293_v20, %v773_v8  ;;  %v298_v22 = vadd.f32 %v294_v21, %v777_v10 }
 0x136   :  { %299 = vst [vmem:[#allocation11] sm:$0xff] %v297_v0 }
 0x137   :  { %300 = vst [vmem:[#allocation11 + $0x8] sm:$0xff] %v298_v22 }
 0x138   :  { %393 = dma.vmem_to_hbm [thread:$0]  %s386_s9, 256, %s388_s12, [#allocation5], %s616_s17, %s616_s17, %s617_s18  }
 0x18c   :  { %v376_v23 = vpop.permute.xlu2 %375 }
 0x1a6   :  { %v372_v24 = vpop.permute.xlu0 %371 }
 0x1a7   :  { %v378_v8 = vsel %vm377_vm3, %v376_v23, %v372_v24 }
 0x1a8   :  { %380 = vst [vmem:[#allocation12] sm:$0x3] %v378_v8 }
 0x1a9   :  { %404 = dma.vmem_to_hbm [thread:$0]  %s400_s7, 32, %s402_s16, [#allocation13]  }
 0x1aa   :  { %608 = dma.done.wait [#allocation5], 256  }
 0x1ab   :  { %609 = vsyncadd [#allocation5], 4294967040 }
 0x1ac   :  { %610 = dma.done.wait [#allocation13], 32  }
 0x1ad   :  { %611 = vsyncadd [#allocation13], 4294967264 }
 0x1ae   :  { %413 = vsyncpa [#allocation4], 1 }
 0x1af   :  { %414 = vsyncpa [#allocation7], 1 }
 0x1b0   :  { %415 = vsyncpa [#allocation10], 1 }
 0x1b1   :  { %416 = vsyncpa [#allocation5], 1 }
 0x1b2   :  { %417 = vsyncpa [#allocation13], 1 }

</bundles_post_ra>
